<compile_context>
chip_gen: v6e
topology: v6e:2x2x1
jax: 0.10.0
libtpu: 0.0.40
codegen_flags: <defaults>
</compile_context>

<pallas_src>
import functools

import jax
import jax.numpy as jnp
from jax.experimental import pallas as pl
from jax.experimental.pallas import tpu as pltpu

LANE = 128      # TPU vreg lane width (last dim)
SUBLANE = 8     # TPU vreg sublane count for f32 (second-to-last dim)


def _round_up(n: int, m: int) -> int:
    return (n + m - 1) // m * m


def _silu(x):
    # x * sigmoid(x).  exp() and the approximate reciprocal both use the EUP
    # slot (nearly free), leaving VALU slots for the adds/muls.
    return x * pl.reciprocal(1.0 + jnp.exp(-x), approx=True)


def mlp_kernel(x_ref, w1_ref, b1_ref, w2_ref, b2_ref, w3_ref, b3_ref, o_ref):
    wdt = w1_ref.dtype           # bf16 weights -> bf16 MXU inputs, f32 accumulation
    x = x_ref[...]

    h = jnp.dot(x.astype(wdt), w1_ref[...],
                preferred_element_type=jnp.float32) + b1_ref[...]
    h = _silu(h)

    h = jnp.dot(h.astype(wdt), w2_ref[...],
                preferred_element_type=jnp.float32) + b2_ref[...]
    h = _silu(h)

    h = jnp.dot(h.astype(wdt), w3_ref[...],
                preferred_element_type=jnp.float32) + b3_ref[...]
    o_ref[...] = _silu(h).astype(o_ref.dtype)


def init_params(key, in_features, out_features, hidden_size):
    """PyTorch-Linear-style init (uniform +/- 1/sqrt(fan_in)); weights stored
    pre-transposed as (fan_in, fan_out) so the kernel computes x @ W + b."""
    keys = jax.random.split(key, 6)

    def linear(kw, kb, fan_in, fan_out):
        bound = 1.0 / jnp.sqrt(jnp.float32(fan_in))
        w = jax.random.uniform(kw, (fan_in, fan_out), jnp.float32, -bound, bound)
        b = jax.random.uniform(kb, (1, fan_out), jnp.float32, -bound, bound)
        return w, b

    w1, b1 = linear(keys[0], keys[1], in_features, hidden_size)
    w2, b2 = linear(keys[2], keys[3], hidden_size, hidden_size)
    w3, b3 = linear(keys[4], keys[5], hidden_size, out_features)
    return {"w1": w1, "b1": b1, "w2": w2, "b2": b2, "w3": w3, "b3": b3}


def pad_params(params, weight_dtype=jnp.float32):
    """Zero-pad hidden/output feature dims to the 128-lane boundary (done once,
    outside the hot loop).  Optionally store weights in bf16 for the v6e/v7x
    MXU path; biases stay f32 so bias-add + SiLU run in f32 everywhere."""
    w1, b1 = params["w1"], params["b1"]
    w2, b2 = params["w2"], params["b2"]
    w3, b3 = params["w3"], params["b3"]

    in_f, hid = w1.shape
    out_f = w3.shape[1]
    hid_p = _round_up(hid, LANE)
    out_p = _round_up(out_f, LANE)

    def pad(a, rows, cols, dtype):
        r, c = a.shape
        return jnp.pad(a, ((0, rows - r), (0, cols - c))).astype(dtype)

    return {
        "w1": pad(w1, in_f, hid_p, weight_dtype),
        "b1": pad(b1, 1, hid_p, jnp.float32),
        "w2": pad(w2, hid_p, hid_p, weight_dtype),
        "b2": pad(b2, 1, hid_p, jnp.float32),
        "w3": pad(w3, hid_p, out_p, weight_dtype),
        "b3": pad(b3, 1, out_p, jnp.float32),
    }


def ann_forward(x, padded_params, out_features, *, block_batch=512):
    """x: (B, in_features) f32.  padded_params: output of pad_params().
    Returns (B, out_features) Q-values."""
    p = padded_params
    B, in_f = x.shape
    out_p = p["w3"].shape[1]

    # Batch tile: multiple of 8 sublanes.  Even at TB=512 the double-buffered
    # (x, out) tiles plus the resident weights are well under 1 MiB of VMEM,
    # far below the 32 MiB default scoped limit on every chip.
    tb = min(_round_up(block_batch, SUBLANE), _round_up(B, SUBLANE))
    b_pad = _round_up(B, tb)
    if b_pad != B:
        x = jnp.pad(x, ((0, b_pad - B), (0, 0)))

    # Grid-invariant operands: whole array resident in VMEM, DMA'd once.
    vmem = pl.BlockSpec(memory_space=pltpu.MemorySpace.VMEM)

    out_padded = pl.pallas_call(
        mlp_kernel,
        out_shape=jax.ShapeDtypeStruct((b_pad, out_p), x.dtype),
        grid=(b_pad // tb,),
        in_specs=[
            pl.BlockSpec((tb, in_f), lambda i: (i, 0)),   # activations: tiled over batch
            vmem, vmem,                                   # w1, b1
            vmem, vmem,                                   # w2, b2
            vmem, vmem,                                   # w3, b3
        ],
        out_specs=pl.BlockSpec((tb, out_p), lambda i: (i, 0)),
        compiler_params=pltpu.CompilerParams(
            dimension_semantics=("parallel",),            # megacore-shard the batch (v7x)
        ),
    )(x, p["w1"], p["b1"], p["w2"], p["b2"], p["w3"], p["b3"])

    return out_padded[:B, :out_features]


def ann_reference(x, params):
    """Pure-JAX reference for correctness checking."""
    h = jax.nn.silu(x @ params["w1"] + params["b1"])
    h = jax.nn.silu(h @ params["w2"] + params["b2"])
    return jax.nn.silu(h @ params["w3"] + params["b3"])


if __name__ == "__main__":
    key = jax.random.PRNGKey(0)
    k_x, k_p = jax.random.split(key)

    # DQN-style shapes: 4 state features, 32 hidden units, 2 actions.  Batch a
    # whole replay minibatch (256 rows) per call, tiled 128 rows at a time so
    # the batch grid (and megacore sharding on v7x) is exercised while the
    # launch/DMA-setup cost is amortized.
    batch, in_features, hidden_size, out_features = 256, 4, 32, 2

    x = jax.random.normal(k_x, (batch, in_features), jnp.float32)
    params = init_params(k_p, in_features, out_features, hidden_size)

    # Pad once, outside the hot loop.  On v6e/v7x pass weight_dtype=jnp.bfloat16
    # to halve weight DMA bytes (activations / bias-add / SiLU stay f32).
    padded = pad_params(params, weight_dtype=jnp.float32)

    fwd = jax.jit(functools.partial(
        ann_forward, out_features=out_features, block_batch=128))

    out = jax.block_until_ready(fwd(x, padded))

    ref = ann_reference(x, params)
    assert out.shape == (batch, out_features)
    # The approx-reciprocal SiLU (EUP) sits within ~1e-3 of the exact f32
    # reference; use a tolerance with comfortable margin.
    err = float(jnp.max(jnp.abs(out - ref)))
    assert jnp.allclose(out, ref, atol=1e-2, rtol=1e-2), err

    print("KERNEL_OK")
</pallas_src>

<mosaic_0001>
module attributes {stable_mosaic.version = 11 : i64} {
  func.func @mlp_kernel(%arg0: i32, %arg1: memref<128x4xf32, #tpu.memory_space<vmem>>, %arg2: memref<4x128xf32, #tpu.memory_space<vmem>>, %arg3: memref<1x128xf32, #tpu.memory_space<vmem>>, %arg4: memref<128x128xf32, #tpu.memory_space<vmem>>, %arg5: memref<1x128xf32, #tpu.memory_space<vmem>>, %arg6: memref<128x128xf32, #tpu.memory_space<vmem>>, %arg7: memref<1x128xf32, #tpu.memory_space<vmem>>, %arg8: memref<128x128xf32, #tpu.memory_space<vmem>>) attributes {dimension_semantics = [#tpu.dimension_semantics<parallel>], iteration_bounds = array<i64: 2>, scalar_prefetch = 0 : i64, scratch_operands = 0 : i64, tpu.core_type = #tpu.core_type<tc>, window_params = [{transform_indices = @transform_0, window_bounds = array<i64: 128, 4>}, {pipeline_mode = #tpu.pipeline_mode<synchronous>, transform_indices = @transform_1, window_bounds = array<i64: 4, 128>}, {pipeline_mode = #tpu.pipeline_mode<synchronous>, transform_indices = @transform_2, window_bounds = array<i64: 1, 128>}, {pipeline_mode = #tpu.pipeline_mode<synchronous>, transform_indices = @transform_3, window_bounds = array<i64: 128, 128>}, {pipeline_mode = #tpu.pipeline_mode<synchronous>, transform_indices = @transform_4, window_bounds = array<i64: 1, 128>}, {pipeline_mode = #tpu.pipeline_mode<synchronous>, transform_indices = @transform_5, window_bounds = array<i64: 128, 128>}, {pipeline_mode = #tpu.pipeline_mode<synchronous>, transform_indices = @transform_6, window_bounds = array<i64: 1, 128>}, {transform_indices = @transform_7, window_bounds = array<i64: 128, 128>}]} {
    %c0 = arith.constant 0 : index
    %c0_0 = arith.constant 0 : index
    %0 = vector.load %arg1[%c0, %c0_0] : memref<128x4xf32, #tpu.memory_space<vmem>>, vector<128x4xf32>
    %c0_1 = arith.constant 0 : index
    %c0_2 = arith.constant 0 : index
    %1 = vector.load %arg2[%c0_1, %c0_2] : memref<4x128xf32, #tpu.memory_space<vmem>>, vector<4x128xf32>
    %cst = arith.constant dense<0.000000e+00> : vector<128x128xf32>
    %2 = tpu.matmul %0, %1, %cst {dimension_numbers = #tpu.dot_dimension_numbers<[1], [0], [0], [1], [0, 0, 1, 1], [], []>} : vector<128x4xf32>, vector<4x128xf32>, vector<128x128xf32> -> vector<128x128xf32>
    %c0_3 = arith.constant 0 : index
    %c0_4 = arith.constant 0 : index
    %3 = vector.load %arg3[%c0_3, %c0_4] : memref<1x128xf32, #tpu.memory_space<vmem>>, vector<1x128xf32>
    %4 = vector.broadcast %3 : vector<1x128xf32> to vector<128x128xf32>
    %5 = arith.addf %2, %4 : vector<128x128xf32>
    %cst_5 = arith.constant 0.000000e+00 : f32
    %6 = vector.broadcast %cst_5 : f32 to vector<128x128xf32>
    %7 = arith.subf %6, %5 : vector<128x128xf32>
    %8 = math.exp %7 : vector<128x128xf32>
    %cst_6 = arith.constant 1.000000e+00 : f32
    %9 = vector.broadcast %cst_6 : f32 to vector<128x128xf32>
    %10 = arith.addf %9, %8 : vector<128x128xf32>
    %11 = tpu.reciprocal %10 {approx = true} : vector<128x128xf32> -> vector<128x128xf32>
    %12 = arith.mulf %5, %11 : vector<128x128xf32>
    %c0_7 = arith.constant 0 : index
    %c0_8 = arith.constant 0 : index
    %13 = vector.load %arg4[%c0_7, %c0_8] : memref<128x128xf32, #tpu.memory_space<vmem>>, vector<128x128xf32>
    %cst_9 = arith.constant dense<0.000000e+00> : vector<128x128xf32>
    %14 = tpu.matmul %12, %13, %cst_9 {dimension_numbers = #tpu.dot_dimension_numbers<[1], [0], [0], [1], [0, 0, 1, 1], [], []>} : vector<128x128xf32>, vector<128x128xf32>, vector<128x128xf32> -> vector<128x128xf32>
    %c0_10 = arith.constant 0 : index
    %c0_11 = arith.constant 0 : index
    %15 = vector.load %arg5[%c0_10, %c0_11] : memref<1x128xf32, #tpu.memory_space<vmem>>, vector<1x128xf32>
    %16 = vector.broadcast %15 : vector<1x128xf32> to vector<128x128xf32>
    %17 = arith.addf %14, %16 : vector<128x128xf32>
    %cst_12 = arith.constant 0.000000e+00 : f32
    %18 = vector.broadcast %cst_12 : f32 to vector<128x128xf32>
    %19 = arith.subf %18, %17 : vector<128x128xf32>
    %20 = math.exp %19 : vector<128x128xf32>
    %cst_13 = arith.constant 1.000000e+00 : f32
    %21 = vector.broadcast %cst_13 : f32 to vector<128x128xf32>
    %22 = arith.addf %21, %20 : vector<128x128xf32>
    %23 = tpu.reciprocal %22 {approx = true} : vector<128x128xf32> -> vector<128x128xf32>
    %24 = arith.mulf %17, %23 : vector<128x128xf32>
    %c0_14 = arith.constant 0 : index
    %c0_15 = arith.constant 0 : index
    %25 = vector.load %arg6[%c0_14, %c0_15] : memref<128x128xf32, #tpu.memory_space<vmem>>, vector<128x128xf32>
    %cst_16 = arith.constant dense<0.000000e+00> : vector<128x128xf32>
    %26 = tpu.matmul %24, %25, %cst_16 {dimension_numbers = #tpu.dot_dimension_numbers<[1], [0], [0], [1], [0, 0, 1, 1], [], []>} : vector<128x128xf32>, vector<128x128xf32>, vector<128x128xf32> -> vector<128x128xf32>
    %c0_17 = arith.constant 0 : index
    %c0_18 = arith.constant 0 : index
    %27 = vector.load %arg7[%c0_17, %c0_18] : memref<1x128xf32, #tpu.memory_space<vmem>>, vector<1x128xf32>
    %28 = vector.broadcast %27 : vector<1x128xf32> to vector<128x128xf32>
    %29 = arith.addf %26, %28 : vector<128x128xf32>
    %cst_19 = arith.constant 0.000000e+00 : f32
    %30 = vector.broadcast %cst_19 : f32 to vector<128x128xf32>
    %31 = arith.subf %30, %29 : vector<128x128xf32>
    %32 = math.exp %31 : vector<128x128xf32>
    %cst_20 = arith.constant 1.000000e+00 : f32
    %33 = vector.broadcast %cst_20 : f32 to vector<128x128xf32>
    %34 = arith.addf %33, %32 : vector<128x128xf32>
    %35 = tpu.reciprocal %34 {approx = true} : vector<128x128xf32> -> vector<128x128xf32>
    %36 = arith.mulf %29, %35 : vector<128x128xf32>
    %c0_21 = arith.constant 0 : index
    %c0_22 = arith.constant 0 : index
    %37 = vector.load %arg8[%c0_21, %c0_22] : memref<128x128xf32, #tpu.memory_space<vmem>>, vector<128x128xf32>
    tpu.vector_store %arg8[%c0_21, %c0_22], %36 {strides = array<i32>} : memref<128x128xf32, #tpu.memory_space<vmem>>, vector<128x128xf32>,
    return
  }
  func.func @transform_0(%arg0: i32) -> (i32, i32) {
    %c0_i32 = arith.constant 0 : i32
    %c0_i32_0 = arith.constant 0 : i32
    return %arg0, %c0_i32 : i32, i32
  }
  func.func @transform_1(%arg0: i32) -> (i32, i32) {
    %c0_i32 = arith.constant 0 : i32
    %c0_i32_0 = arith.constant 0 : i32
    %c0_i32_1 = arith.constant 0 : i32
    return %c0_i32, %c0_i32_0 : i32, i32
  }
  func.func @transform_2(%arg0: i32) -> (i32, i32) {
    %c0_i32 = arith.constant 0 : i32
    %c0_i32_0 = arith.constant 0 : i32
    %c0_i32_1 = arith.constant 0 : i32
    return %c0_i32, %c0_i32_0 : i32, i32
  }
  func.func @transform_3(%arg0: i32) -> (i32, i32) {
    %c0_i32 = arith.constant 0 : i32
    %c0_i32_0 = arith.constant 0 : i32
    %c0_i32_1 = arith.constant 0 : i32
    return %c0_i32, %c0_i32_0 : i32, i32
  }
  func.func @transform_4(%arg0: i32) -> (i32, i32) {
    %c0_i32 = arith.constant 0 : i32
    %c0_i32_0 = arith.constant 0 : i32
    %c0_i32_1 = arith.constant 0 : i32
    return %c0_i32, %c0_i32_0 : i32, i32
  }
  func.func @transform_5(%arg0: i32) -> (i32, i32) {
    %c0_i32 = arith.constant 0 : i32
    %c0_i32_0 = arith.constant 0 : i32
    %c0_i32_1 = arith.constant 0 : i32
    return %c0_i32, %c0_i32_0 : i32, i32
  }
  func.func @transform_6(%arg0: i32) -> (i32, i32) {
    %c0_i32 = arith.constant 0 : i32
    %c0_i32_0 = arith.constant 0 : i32
    %c0_i32_1 = arith.constant 0 : i32
    return %c0_i32, %c0_i32_0 : i32, i32
  }
  func.func @transform_7(%arg0: i32) -> (i32, i32) {
    %c0_i32 = arith.constant 0 : i32
    %c0_i32_0 = arith.constant 0 : i32
    return %arg0, %c0_i32 : i32, i32
  }
}

</mosaic_0001>

<bundles_post_ra>
// kernel: ann_forward.1
= control target key start
LH: loop header
LB: loop body
LE: loop exit
PB: predicated region body
PF: predicated region fallthrough
CT: control target
= control target key end

     0   :  { %s1698_s24 = smov 0   ;;  %s2128_s0 = inlined_call_operand.vmem [shape: f32[256,4], index: 0, kind: input, shape index: {}]   ;;  %s2129_s1 = inlined_call_operand.vmem [shape: f32[4,128], index: 1, kind: input, shape index: {}]   ;;  %s2130_s2 = inlined_call_operand.vmem [shape: f32[1,128], index: 2, kind: input, shape index: {}]   ;;  %s2131_s3 = inlined_call_operand.vmem [shape: f32[128,128], index: 3, kind: input, shape index: {}]   ;;  %s2132_s4 = inlined_call_operand.vmem [shape: f32[1,128], index: 4, kind: input, shape index: {}]   ;;  %s2133_s5 = inlined_call_operand.vmem [shape: f32[128,128], index: 5, kind: input, shape index: {}]   ;;  %s2134_s6 = inlined_call_operand.vmem [shape: f32[1,128], index: 6, kind: input, shape index: {}]   ;;  %s2135_s7 = inlined_call_operand.vmem [shape: f32[256,128], index: 7, kind: output, shape index: {}]  }
   0x1 LB: > { %s1200_s25 = sadd.s32 4294967295, %s1656_s24   ;;  %p1204_p0 = scmp.ge.s32.totalorder %s1656_s24, 1  ;;  %s1656_s24 = sphi %s1698_s24, %s17_s24  }
   0x2   : > { %p238_p1 = scmp.lt.s32.totalorder %s1656_s24, 3 }
   0x4   : > { %p239_p2 = pnand %p1204_p0, %p238_p1 }
   0x5   : > { %s1205_s28 = sshll.u32 (!%p239_p2), %s1200_s25, 4 }
   0x6   : > { %242 = sbr.rel (%p239_p2) target bundleno = 747 (0x2eb), region = 48  ;;  %p271_p3 = scmp.lt.s32.totalorder (!%p239_p2), %s1205_s28, 31 }
   0xb   : > { %v298_v0 = vld [vmem:[%s2129_s1] sm:$0xf]  ;;  %vm355_vm0 = vcmask 1043456   ;;  %s2137_s28 = smov (!%p271_p3, %s1205_s28), 31  ;;  %vm306_vm1 = vcmask 31744   ;;  %v615_v17 = vld [vmem:[%s2131_s3 + $0x78] sm:$0xff] }
   0xc   : > { %1312 = vmatprep.subr.msk.mxu0 %vm355_vm0, %v298_v0  ;;  %s1206_s29 = sshll.u32 %s2137_s28, 3  ;;  %1338 = vmatprep.subr.mxu1 %v615_v17  ;;  %v614_v18 = vld [vmem:[%s2131_s3 + $0x70] sm:$0xff]  ;;  %v613_v19 = vld [vmem:[%s2131_s3 + $0x68] sm:$0xff]  ;;  %v612_v20 = vld [vmem:[%s2131_s3 + $0x60] sm:$0xff] }
   0xd   : > { %1313 = vmatpush3.msk.msra.mxu0 %vm355_vm0, %v298_v0  ;;  %s1717_s9 = scalar_lea.vmem %s2128_s0, %s1206_s29  ;;  %1339 = vmatpush3.msra.mxu1 %v615_v17  ;;  %v611_v21 = vld [vmem:[%s2131_s3 + $0x58] sm:$0xff]  ;;  %v610_v22 = vld [vmem:[%s2131_s3 + $0x50] sm:$0xff]  ;;  %v609_v23 = vld [vmem:[%s2131_s3 + $0x48] sm:$0xff]  ;;  %s2091_s22 = scalar_lea.vmem %s2135_s7, %s1206_s29 }
   0xe   : > { %v282_v1 = vld [vmem:[%s1717_s9] sm:$0xff]  ;;  %v283_v2 = vld [vmem:[%s1717_s9 + $0x8] sm:$0xff]  ;;  %v284_v3 = vld [vmem:[%s1717_s9 + $0x10] sm:$0xff]  ;;  %1340 = vmatprep.subr.mxu1 %v614_v18 }
   0xf   : > { %1314 = vmatprep.mubr.msk.f32.mxu0 %vm306_vm1, %v282_v1  ;;  %v285_v4 = vld [vmem:[%s1717_s9 + $0x18] sm:$0xff]  ;;  %v286_v5 = vld [vmem:[%s1717_s9 + $0x20] sm:$0xff]  ;;  %v287_v6 = vld [vmem:[%s1717_s9 + $0x28] sm:$0xff]  ;;  %1341 = vmatpush3.msra.mxu1 %v614_v18 }
  0x10   : > { %1315 = vmatmul.mubr.msk.f32.vlgmr.msra.gmra.mxu0 %vm306_vm1, %v283_v2  ;;  %v288_v7 = vld [vmem:[%s1717_s9 + $0x30] sm:$0xff]  ;;  %v289_v8 = vld [vmem:[%s1717_s9 + $0x38] sm:$0xff]  ;;  %v290_v9 = vld [vmem:[%s1717_s9 + $0x40] sm:$0xff]  ;;  %1342 = vmatprep.subr.mxu1 %v613_v19 }
  0x11   : > { %1317 = vmatprep.mubr.msk.f32.mxu0 %vm306_vm1, %v284_v3  ;;  %v291_v10 = vld [vmem:[%s1717_s9 + $0x48] sm:$0xff]  ;;  %v292_v11 = vld [vmem:[%s1717_s9 + $0x50] sm:$0xff]  ;;  %v293_v12 = vld [vmem:[%s1717_s9 + $0x58] sm:$0xff]  ;;  %1343 = vmatpush3.msra.mxu1 %v613_v19 }
  0x12   : > { %v294_v13 = vld [vmem:[%s1717_s9 + $0x60] sm:$0xff]  ;;  %v295_v14 = vld [vmem:[%s1717_s9 + $0x68] sm:$0xff]  ;;  %v296_v15 = vld [vmem:[%s1717_s9 + $0x70] sm:$0xff]  ;;  %1344 = vmatprep.subr.mxu1 %v612_v20 }
  0x13   : > { %v297_v16 = vld [vmem:[%s1717_s9 + $0x78] sm:$0xff]  ;;  %1345 = vmatpush3.msra.mxu1 %v612_v20  ;;  %v608_v24 = vld [vmem:[%s2131_s3 + $0x40] sm:$0xff]  ;;  %v606_v26 = vld [vmem:[%s2131_s3 + $0x30] sm:$0xff] }
  0x14   : > { %1318 = vmatmul.mubr.msk.f32.gmra.mxu0 %vm306_vm1, %v285_v4  ;;  %1346 = vmatprep.subr.mxu1 %v611_v21  ;;  %v607_v25 = vld [vmem:[%s2131_s3 + $0x38] sm:$0xff]  ;;  %v605_v27 = vld [vmem:[%s2131_s3 + $0x28] sm:$0xff]  ;;  %v604_v28 = vld [vmem:[%s2131_s3 + $0x20] sm:$0xff] }
  0x15   : > { %1320 = vmatprep.mubr.msk.f32.mxu0 %vm306_vm1, %v286_v5  ;;  %1347 = vmatpush3.msra.mxu1 %v611_v21  ;;  %v603_v29 = vld [vmem:[%s2131_s3 + $0x18] sm:$0xff]  ;;  %v602_v30 = vld [vmem:[%s2131_s3 + $0x10] sm:$0xff]  ;;  %v601_v31 = vld [vmem:[%s2131_s3 + $0x8] sm:$0xff] }
  0x16   : > { %1348 = vmatprep.subr.mxu1 %v610_v22  ;;  %v600_v32 = vld [vmem:[%s2131_s3] sm:$0xff] }
  0x17   : > { %1349 = vmatpush3.msra.mxu1 %v610_v22  ;;  %v1802_v33 = vld [vmem:[%s2130_s2] ss:$0 sm:$0xff] }
  0x18   : > { %1321 = vmatmul.mubr.msk.f32.gmra.mxu0 %vm306_vm1, %v287_v6  ;;  %1350 = vmatprep.subr.mxu1 %v609_v23 }
  0x19   : > { %1323 = vmatprep.mubr.msk.f32.mxu0 %vm306_vm1, %v288_v7  ;;  %1351 = vmatpush3.msra.mxu1 %v609_v23 }
  0x1a   : > { %1352 = vmatprep.subr.mxu1 %v608_v24 }
  0x1b   : > { %1353 = vmatpush3.msra.mxu1 %v608_v24 }
  0x1c   : > { %1324 = vmatmul.mubr.msk.f32.gmra.mxu0 %vm306_vm1, %v289_v8  ;;  %1354 = vmatprep.subr.mxu1 %v607_v25 }
  0x1d   : > { %1326 = vmatprep.mubr.msk.f32.mxu0 %vm306_vm1, %v290_v9  ;;  %1355 = vmatpush3.msra.mxu1 %v607_v25 }
  0x1e   : > { %1356 = vmatprep.subr.mxu1 %v606_v26 }
  0x1f   : > { %1357 = vmatpush3.msra.mxu1 %v606_v26 }
  0x20   : > { %1327 = vmatmul.mubr.msk.f32.gmra.mxu0 %vm306_vm1, %v291_v10  ;;  %1358 = vmatprep.subr.mxu1 %v605_v27 }
  0x21   : > { %1329 = vmatprep.mubr.msk.f32.mxu0 %vm306_vm1, %v292_v11  ;;  %1359 = vmatpush3.msra.mxu1 %v605_v27 }
  0x22   : > { %1360 = vmatprep.subr.mxu1 %v604_v28 }
  0x23   : > { %1361 = vmatpush3.msra.mxu1 %v604_v28 }
  0x24   : > { %1330 = vmatmul.mubr.msk.f32.gmra.mxu0 %vm306_vm1, %v293_v12  ;;  %1362 = vmatprep.subr.mxu1 %v603_v29 }
  0x25   : > { %1332 = vmatprep.mubr.msk.f32.mxu0 %vm306_vm1, %v294_v13  ;;  %1363 = vmatpush3.msra.mxu1 %v603_v29 }
  0x26   : > { %1364 = vmatprep.subr.mxu1 %v602_v30 }
  0x27   : > { %1365 = vmatpush3.msra.mxu1 %v602_v30 }
  0x28   : > { %1333 = vmatmul.mubr.msk.f32.gmra.mxu0 %vm306_vm1, %v295_v14  ;;  %1366 = vmatprep.subr.mxu1 %v601_v31 }
  0x29   : > { %1335 = vmatprep.mubr.msk.f32.mxu0 %vm306_vm1, %v296_v15  ;;  %1367 = vmatpush3.msra.mxu1 %v601_v31 }
  0x2a   : > { %1368 = vmatprep.subr.mxu1 %v600_v32 }
  0x2b   : > { %1369 = vmatpush3.msra.mxu1 %v600_v32 }
  0x2c   : > { %1336 = vmatmul.mubr.msk.f32.gmra.mxu0 %vm306_vm1, %v297_v16 }
  0xd0   : > { %v1316_v34 = vpop.f32.mrf.mxu0 }
  0xd1   : > { %v1805_v35 = vadd.f32 %v1316_v34, %v1802_v33 }
  0xd2   : > { %v425_v36 = vpop.f32.mrf.mxu0 }
  0xd3   : > { %v505_v37 = vsub.f32 0.0, %v1805_v35  ;;  %v1809_v38 = vadd.f32 %v1802_v33, %v425_v36 }
  0xd4   : > { %v1319_v39 = vpop.f32.mrf.mxu0 }
  0xd5   : > { %v522_v40 = vmul.f32 1.442695, %v505_v37  ;;  %v504_v41 = vsub.f32 0.0, %v1809_v38  ;;  %v1813_v42 = vadd.f32 %v1319_v39, %v1802_v33 }
  0xd6   : > { %v435_v43 = vpop.f32.mrf.mxu0 }
  0xd7   : > { %1458 = vpow2.f32 %v522_v40  ;;  %v520_v44 = vmul.f32 1.442695, %v504_v41  ;;  %v507_v45 = vsub.f32 0.0, %v1813_v42  ;;  %v1817_v46 = vadd.f32 %v1802_v33, %v435_v43 }
  0xd8   : > { %v1322_v47 = vpop.f32.mrf.mxu0 }
  0xd9   : > { %1460 = vpow2.f32 %v520_v44  ;;  %v526_v48 = vmul.f32 1.442695, %v507_v45  ;;  %v506_v49 = vsub.f32 0.0, %v1817_v46  ;;  %v1821_v50 = vadd.f32 %v1322_v47, %v1802_v33 }
  0xda   : > { %v445_v51 = vpop.f32.mrf.mxu0 }
  0xdb   : > { %1462 = vpow2.f32 %v526_v48  ;;  %v524_v52 = vmul.f32 1.442695, %v506_v49  ;;  %v509_v53 = vsub.f32 0.0, %v1821_v50  ;;  %v1825_v54 = vadd.f32 %v1802_v33, %v445_v51 }
  0xdc   : > { %v1325_v55 = vpop.f32.mrf.mxu0 }
  0xdd   : > { %1464 = vpow2.f32 %v524_v52  ;;  %v530_v56 = vmul.f32 1.442695, %v509_v53  ;;  %v508_v57 = vsub.f32 0.0, %v1825_v54  ;;  %v1829_v58 = vadd.f32 %v1325_v55, %v1802_v33 }
  0xde   : > { %v455_v59 = vpop.f32.mrf.mxu0 }
  0xdf   : > { %1466 = vpow2.f32 %v530_v56  ;;  %v528_v60 = vmul.f32 1.442695, %v508_v57  ;;  %v511_v61 = vsub.f32 0.0, %v1829_v58  ;;  %v1833_v62 = vadd.f32 %v1802_v33, %v455_v59 }
  0xe0   : > { %v1328_v63 = vpop.f32.mrf.mxu0 }
  0xe1   : > { %1468 = vpow2.f32 %v528_v60  ;;  %v534_v0 = vmul.f32 1.442695, %v511_v61  ;;  %v510_v1 = vsub.f32 0.0, %v1833_v62  ;;  %v1837_v2 = vadd.f32 %v1328_v63, %v1802_v33 }
  0xe2   : > { %v465_v3 = vpop.f32.mrf.mxu0 }
  0xe3   : > { %1470 = vpow2.f32 %v534_v0  ;;  %v532_v4 = vmul.f32 1.442695, %v510_v1  ;;  %v513_v5 = vsub.f32 0.0, %v1837_v2  ;;  %v1841_v6 = vadd.f32 %v1802_v33, %v465_v3 }
  0xe4   : > { %v1459_v7 = vpop.eup %1458  ;;  %v1331_v8 = vpop.f32.mrf.mxu0 }
  0xe5   : > { %v553_v9 = vadd.f32 1.0, %v1459_v7  ;;  %1472 = vpow2.f32 %v532_v4  ;;  %v538_v10 = vmul.f32 1.442695, %v513_v5  ;;  %v512_v11 = vsub.f32 0.0, %v1841_v6 }
  0xe6   : > { %v1461_v12 = vpop.eup %1460  ;;  %v1845_v13 = vadd.f32 %v1331_v8, %v1802_v33  ;;  %v475_v14 = vpop.f32.mrf.mxu0 }
  0xe7   : > { %1474 = vrcp.f32 %v553_v9  ;;  %v552_v15 = vadd.f32 1.0, %v1461_v12  ;;  %v536_v16 = vmul.f32 1.442695, %v512_v11  ;;  %v1848_v17 = vadd.f32 %v1802_v33, %v475_v14 }
  0xe8   : > { %v1463_v18 = vpop.eup %1462  ;;  %1476 = vpow2.f32 %v538_v10  ;;  %v515_v19 = vsub.f32 0.0, %v1845_v13  ;;  %v1334_v20 = vpop.f32.mrf.mxu0 }
  0xe9   : > { %1478 = vrcp.f32 %v552_v15  ;;  %v555_v21 = vadd.f32 1.0, %v1463_v18  ;;  %v514_v22 = vsub.f32 0.0, %v1848_v17  ;;  %v1853_v23 = vadd.f32 %v1334_v20, %v1802_v33 }
  0xea   : > { %v1465_v24 = vpop.eup %1464  ;;  %1480 = vpow2.f32 %v536_v16  ;;  %v542_v25 = vmul.f32 1.442695, %v515_v19  ;;  %v485_v26 = vpop.f32.mrf.mxu0 }
  0xeb   : > { %1482 = vrcp.f32 %v555_v21  ;;  %v554_v27 = vadd.f32 1.0, %v1465_v24  ;;  %v540_v28 = vmul.f32 1.442695, %v514_v22  ;;  %v517_v29 = vsub.f32 0.0, %v1853_v23 }
  0xec   : > { %v1467_v30 = vpop.eup %1466  ;;  %1484 = vpow2.f32 %v542_v25  ;;  %v1857_v31 = vadd.f32 %v1802_v33, %v485_v26  ;;  %v1337_v32 = vpop.f32.mrf.mxu0 }
  0xed   : > { %1486 = vrcp.f32 %v554_v27  ;;  %v557_v34 = vadd.f32 1.0, %v1467_v30  ;;  %v546_v36 = vmul.f32 1.442695, %v517_v29  ;;  %v1860_v37 = vadd.f32 %v1337_v32, %v1802_v33 }
  0xee   : > { %v1469_v39 = vpop.eup %1468  ;;  %1488 = vpow2.f32 %v540_v28  ;;  %v516_v40 = vsub.f32 0.0, %v1857_v31  ;;  %v495_v41 = vpop.f32.mrf.mxu0 }
  0xef   : > { %1490 = vrcp.f32 %v557_v34  ;;  %v556_v43 = vadd.f32 1.0, %v1469_v39  ;;  %v519_v44 = vsub.f32 0.0, %v1860_v37  ;;  %v1865_v45 = vadd.f32 %v1802_v33, %v495_v41 }
  0xf0   : > { %v1471_v47 = vpop.eup %1470  ;;  %1492 = vpow2.f32 %v546_v36  ;;  %v544_v48 = vmul.f32 1.442695, %v516_v40 }
  0xf1   : > { %1494 = vrcp.f32 %v556_v43  ;;  %v559_v49 = vadd.f32 1.0, %v1471_v47  ;;  %v550_v51 = vmul.f32 1.442695, %v519_v44  ;;  %v518_v52 = vsub.f32 0.0, %v1865_v45  ;;  %v874_v43 = vld [vmem:[%s2133_s5 + $0x50] sm:$0xff]  ;;  %v873_v44 = vld [vmem:[%s2133_s5 + $0x48] sm:$0xff] }
  0xf2   : > { %v1473_v53 = vpop.eup %1472  ;;  %1496 = vpow2.f32 %v544_v48  ;;  %v871_v47 = vld [vmem:[%s2133_s5 + $0x38] sm:$0xff]  ;;  %v870_v48 = vld [vmem:[%s2133_s5 + $0x30] sm:$0xff] }
  0xf3   : > { %1498 = vrcp.f32 %v559_v49  ;;  %v558_v55 = vadd.f32 1.0, %v1473_v53  ;;  %v548_v56 = vmul.f32 1.442695, %v518_v52  ;;  %v869_v49 = vld [vmem:[%s2133_s5 + $0x28] sm:$0xff]  ;;  %v867_v52 = vld [vmem:[%s2133_s5 + $0x18] sm:$0xff]  ;;  %v866_v53 = vld [vmem:[%s2133_s5 + $0x10] sm:$0xff] }
  0xf4   : > { %v1475_v57 = vpop.eup %1474  ;;  %1500 = vpow2.f32 %v550_v51  ;;  %v868_v51 = vld [vmem:[%s2133_s5 + $0x20] sm:$0xff] }
  0xf5   : > { %v1477_v59 = vpop.eup %1476  ;;  %1502 = vrcp.f32 %v558_v55  ;;  %v585_v1 = vmul.f32 %v1475_v57, %v1805_v35  ;;  %v865_v55 = vld [vmem:[%s2133_s5 + $0x8] sm:$0xff]  ;;  %v1935_v57 = vld [vmem:[%s2132_s4] ss:$0 sm:$0xff] }
  0xf6   : > { %v1479_v60 = vpop.eup %1478  ;;  %v561_v33 = vadd.f32 1.0, %v1477_v59  ;;  %1504 = vpow2.f32 %v548_v56  ;;  %v864_v56 = vld [vmem:[%s2133_s5] sm:$0xff] }
  0xf7   : > { %v1481_v61 = vpop.eup %1480  ;;  %v584_v63 = vmul.f32 %v1479_v60, %v1809_v38 }
  0xf8   : > { %v1483_v0 = vpop.eup %1482  ;;  %v560_v3 = vadd.f32 1.0, %v1481_v61  ;;  %1506 = vrcp.f32 %v561_v33 }
  0xf9   : > { %v1485_v4 = vpop.eup %1484  ;;  %1370 = vmatprep.mubr.f32.mxu1 %v584_v63  ;;  %v587_v11 = vmul.f32 %v1483_v0, %v1813_v42 }
  0xfa   : > { %v1487_v5 = vpop.eup %1486  ;;  %1508 = vrcp.f32 %v560_v3  ;;  %v563_v7 = vadd.f32 1.0, %v1485_v4  ;;  %1371 = vmatmul.mubr.f32.vlgmr.msra.gmra.mxu1 %v585_v1 }
  0xfb   : > { %v1489_v8 = vpop.eup %1488  ;;  %v586_v9 = vmul.f32 %v1487_v5, %v1817_v46 }
  0xfc   : > { %v1491_v10 = vpop.eup %1490  ;;  %v562_v12 = vadd.f32 1.0, %v1489_v8  ;;  %1510 = vrcp.f32 %v563_v7 }
  0xfd   : > { %v1493_v14 = vpop.eup %1492  ;;  %1373 = vmatprep.mubr.f32.mxu1 %v586_v9  ;;  %v589_v19 = vmul.f32 %v1491_v10, %v1821_v50 }
  0xfe   : > { %v1495_v38 = vpop.eup %1494  ;;  %1512 = vrcp.f32 %v562_v12  ;;  %v565_v35 = vadd.f32 1.0, %v1493_v14  ;;  %1374 = vmatmul.mubr.f32.gmra.mxu1 %v587_v11 }
  0xff   : > { %v1497_v15 = vpop.eup %1496  ;;  %v588_v16 = vmul.f32 %v1495_v38, %v1825_v54 }
 0x100   : > { %v1499_v18 = vpop.eup %1498  ;;  %v564_v20 = vadd.f32 1.0, %v1497_v15  ;;  %1514 = vrcp.f32 %v565_v35 }
 0x101   : > { %v1501_v21 = vpop.eup %1500  ;;  %1376 = vmatprep.mubr.f32.mxu1 %v588_v16  ;;  %v591_v25 = vmul.f32 %v1499_v18, %v1829_v58 }
 0x102   : > { %v1503_v46 = vpop.eup %1502  ;;  %1516 = vrcp.f32 %v564_v20  ;;  %v567_v42 = vadd.f32 1.0, %v1501_v21  ;;  %1377 = vmatmul.mubr.f32.gmra.mxu1 %v589_v19 }
 0x103   : > { %v1505_v22 = vpop.eup %1504  ;;  %v590_v24 = vmul.f32 %v1503_v46, %v1833_v62 }
 0x104   : > { %v566_v26 = vadd.f32 1.0, %v1505_v22  ;;  %1518 = vrcp.f32 %v567_v42 }
 0x105   : > { %1379 = vmatprep.mubr.f32.mxu1 %v590_v24  ;;  %v1507_v54 = vpop.eup %1506 }
 0x106   : > { %1520 = vrcp.f32 %v566_v26  ;;  %1380 = vmatmul.mubr.f32.gmra.mxu1 %v591_v25  ;;  %v593_v28 = vmul.f32 %v1507_v54, %v1837_v2 }
 0x107   : > { %v1509_v50 = vpop.eup %1508 }
 0x108   : > { %v592_v27 = vmul.f32 %v1509_v50, %v1841_v6 }
 0x109   : > { %v1511_v29 = vpop.eup %1510 }
 0x10a   : > { %1382 = vmatprep.mubr.f32.mxu1 %v592_v27  ;;  %v595_v62 = vmul.f32 %v1511_v29, %v1845_v13  ;;  %v879_v13 = vld [vmem:[%s2133_s5 + $0x78] sm:$0xff] }
 0x10b   : > { %v1513_v30 = vpop.eup %1512  ;;  %1383 = vmatmul.mubr.f32.gmra.mxu1 %v593_v28  ;;  %1394 = vmatprep.subr.mxu0 %v879_v13 }
 0x10c   : > { %v594_v32 = vmul.f32 %v1513_v30, %v1848_v17  ;;  %1395 = vmatpush3.msra.mxu0 %v879_v13  ;;  %v878_v17 = vld [vmem:[%s2133_s5 + $0x70] sm:$0xff] }
 0x10d   : > { %v1515_v58 = vpop.eup %1514  ;;  %1396 = vmatprep.subr.mxu0 %v878_v17 }
 0x10e   : > { %1385 = vmatprep.mubr.f32.mxu1 %v594_v32  ;;  %v597_v39 = vmul.f32 %v1515_v58, %v1853_v23  ;;  %1397 = vmatpush3.msra.mxu0 %v878_v17  ;;  %v877_v23 = vld [vmem:[%s2133_s5 + $0x68] sm:$0xff] }
 0x10f   : > { %v1517_v34 = vpop.eup %1516  ;;  %1386 = vmatmul.mubr.f32.gmra.mxu1 %v595_v62  ;;  %1398 = vmatprep.subr.mxu0 %v877_v23 }
 0x110   : > { %v596_v36 = vmul.f32 %v1517_v34, %v1857_v31  ;;  %1399 = vmatpush3.msra.mxu0 %v877_v23  ;;  %v876_v31 = vld [vmem:[%s2133_s5 + $0x60] sm:$0xff] }
 0x111   : > { %v1519_v40 = vpop.eup %1518  ;;  %1400 = vmatprep.subr.mxu0 %v876_v31 }
 0x112   : > { %1388 = vmatprep.mubr.f32.mxu1 %v596_v36  ;;  %v599_v41 = vmul.f32 %v1519_v40, %v1860_v37  ;;  %1401 = vmatpush3.msra.mxu0 %v876_v31  ;;  %v875_v37 = vld [vmem:[%s2133_s5 + $0x58] sm:$0xff] }
 0x113   : > { %v1521_v6 = vpop.eup %1520  ;;  %1389 = vmatmul.mubr.f32.gmra.mxu1 %v597_v39  ;;  %1402 = vmatprep.subr.mxu0 %v875_v37 }
 0x114   : > { %v598_v2 = vmul.f32 %v1521_v6, %v1865_v45  ;;  %1403 = vmatpush3.msra.mxu0 %v875_v37  ;;  %v872_v45 = vld [vmem:[%s2133_s5 + $0x40] sm:$0xff] }
 0x115   : > { %1404 = vmatprep.subr.mxu0 %v874_v43 }
 0x116   : > { %1391 = vmatprep.mubr.f32.mxu1 %v598_v2  ;;  %1405 = vmatpush3.msra.mxu0 %v874_v43 }
 0x117   : > { %1392 = vmatmul.mubr.f32.gmra.mxu1 %v599_v41  ;;  %1406 = vmatprep.subr.mxu0 %v873_v44 }
 0x118   : > { %1407 = vmatpush3.msra.mxu0 %v873_v44 }
 0x119   : > { %1408 = vmatprep.subr.mxu0 %v872_v45 }
 0x11a   : > { %1409 = vmatpush3.msra.mxu0 %v872_v45 }
 0x11b   : > { %1410 = vmatprep.subr.mxu0 %v871_v47 }
 0x11c   : > { %1411 = vmatpush3.msra.mxu0 %v871_v47 }
 0x11d   : > { %1412 = vmatprep.subr.mxu0 %v870_v48 }
 0x11e   : > { %1413 = vmatpush3.msra.mxu0 %v870_v48 }
 0x11f   : > { %1414 = vmatprep.subr.mxu0 %v869_v49 }
 0x120   : > { %1415 = vmatpush3.msra.mxu0 %v869_v49 }
 0x121   : > { %1416 = vmatprep.subr.mxu0 %v868_v51 }
 0x122   : > { %1417 = vmatpush3.msra.mxu0 %v868_v51 }
 0x123   : > { %1418 = vmatprep.subr.mxu0 %v867_v52 }
 0x124   : > { %1419 = vmatpush3.msra.mxu0 %v867_v52 }
 0x125   : > { %1420 = vmatprep.subr.mxu0 %v866_v53 }
 0x126   : > { %1421 = vmatpush3.msra.mxu0 %v866_v53 }
 0x127   : > { %1422 = vmatprep.subr.mxu0 %v865_v55 }
 0x128   : > { %1423 = vmatpush3.msra.mxu0 %v865_v55 }
 0x129   : > { %1424 = vmatprep.subr.mxu0 %v864_v56 }
 0x12a   : > { %1425 = vmatpush3.msra.mxu0 %v864_v56 }
 0x1ba   : > { %v1372_v59 = vpop.f32.mrf.mxu1 }
 0x1bb   : > { %v1938_v60 = vadd.f32 %v1372_v59, %v1935_v57 }
 0x1bc   : > { %v689_v33 = vpop.f32.mrf.mxu1 }
 0x1bd   : > { %v769_v61 = vsub.f32 0.0, %v1938_v60  ;;  %v1942_v63 = vadd.f32 %v1935_v57, %v689_v33 }
 0x1be   : > { %v1375_v0 = vpop.f32.mrf.mxu1 }
 0x1bf   : > { %v786_v1 = vmul.f32 1.442695, %v769_v61  ;;  %v768_v3 = vsub.f32 0.0, %v1942_v63  ;;  %v1946_v4 = vadd.f32 %v1375_v0, %v1935_v57 }
 0x1c0   : > { %v699_v5 = vpop.f32.mrf.mxu1 }
 0x1c1   : > { %1522 = vpow2.f32 %v786_v1  ;;  %v784_v7 = vmul.f32 1.442695, %v768_v3  ;;  %v771_v8 = vsub.f32 0.0, %v1946_v4  ;;  %v1950_v9 = vadd.f32 %v1935_v57, %v699_v5 }
 0x1c2   : > { %v1378_v10 = vpop.f32.mrf.mxu1 }
 0x1c3   : > { %1524 = vpow2.f32 %v784_v7  ;;  %v790_v11 = vmul.f32 1.442695, %v771_v8  ;;  %v770_v12 = vsub.f32 0.0, %v1950_v9  ;;  %v1954_v14 = vadd.f32 %v1378_v10, %v1935_v57 }
 0x1c4   : > { %v709_v38 = vpop.f32.mrf.mxu1 }
 0x1c5   : > { %1526 = vpow2.f32 %v790_v11  ;;  %v788_v35 = vmul.f32 1.442695, %v770_v12  ;;  %v773_v15 = vsub.f32 0.0, %v1954_v14  ;;  %v1958_v16 = vadd.f32 %v1935_v57, %v709_v38 }
 0x1c6   : > { %v1381_v18 = vpop.f32.mrf.mxu1 }
 0x1c7   : > { %1528 = vpow2.f32 %v788_v35  ;;  %v794_v19 = vmul.f32 1.442695, %v773_v15  ;;  %v772_v20 = vsub.f32 0.0, %v1958_v16  ;;  %v1962_v21 = vadd.f32 %v1381_v18, %v1935_v57 }
 0x1c8   : > { %v719_v46 = vpop.f32.mrf.mxu1 }
 0x1c9   : > { %1530 = vpow2.f32 %v794_v19  ;;  %v792_v42 = vmul.f32 1.442695, %v772_v20  ;;  %v775_v22 = vsub.f32 0.0, %v1962_v21  ;;  %v1966_v24 = vadd.f32 %v1935_v57, %v719_v46 }
 0x1cb   : > { %1532 = vpow2.f32 %v792_v42  ;;  %v798_v25 = vmul.f32 1.442695, %v775_v22  ;;  %v774_v26 = vsub.f32 0.0, %v1966_v24  ;;  %v1384_v54 = vpop.f32.mrf.mxu1 }
 0x1cc   : > { %v1970_v50 = vadd.f32 %v1384_v54, %v1935_v57 }
 0x1cd   : > { %1534 = vpow2.f32 %v798_v25  ;;  %v796_v27 = vmul.f32 1.442695, %v774_v26  ;;  %v729_v28 = vpop.f32.mrf.mxu1 }
 0x1ce   : > { %v1523_v29 = vpop.eup %1522  ;;  %v777_v30 = vsub.f32 0.0, %v1970_v50  ;;  %v1974_v32 = vadd.f32 %v1935_v57, %v729_v28 }
 0x1cf   : > { %v817_v62 = vadd.f32 1.0, %v1523_v29  ;;  %1536 = vpow2.f32 %v796_v27  ;;  %v1387_v58 = vpop.f32.mrf.mxu1 }
 0x1d0   : > { %v1525_v34 = vpop.eup %1524  ;;  %v802_v36 = vmul.f32 1.442695, %v777_v30  ;;  %v776_v39 = vsub.f32 0.0, %v1974_v32  ;;  %v1978_v40 = vadd.f32 %v1387_v58, %v1935_v57 }
 0x1d1   : > { %1538 = vrcp.f32 %v817_v62  ;;  %v816_v6 = vadd.f32 1.0, %v1525_v34  ;;  %v739_v2 = vpop.f32.mrf.mxu1 }
 0x1d2   : > { %v1527_v41 = vpop.eup %1526  ;;  %1540 = vpow2.f32 %v802_v36  ;;  %v800_v13 = vmul.f32 1.442695, %v776_v39  ;;  %v779_v17 = vsub.f32 0.0, %v1978_v40  ;;  %v1982_v23 = vadd.f32 %v1935_v57, %v739_v2 }
 0x1d3   : > { %1542 = vrcp.f32 %v816_v6  ;;  %v819_v31 = vadd.f32 1.0, %v1527_v41  ;;  %v1390_v37 = vpop.f32.mrf.mxu1 }
 0x1d4   : > { %v1529_v43 = vpop.eup %1528  ;;  %1544 = vpow2.f32 %v800_v13  ;;  %v806_v44 = vmul.f32 1.442695, %v779_v17  ;;  %v778_v45 = vsub.f32 0.0, %v1982_v23  ;;  %v1986_v47 = vadd.f32 %v1390_v37, %v1935_v57 }
 0x1d5   : > { %1546 = vrcp.f32 %v819_v31  ;;  %v818_v48 = vadd.f32 1.0, %v1529_v43  ;;  %v749_v49 = vpop.f32.mrf.mxu1 }
 0x1d6   : > { %v1531_v51 = vpop.eup %1530  ;;  %1548 = vpow2.f32 %v806_v44  ;;  %v804_v52 = vmul.f32 1.442695, %v778_v45  ;;  %v781_v53 = vsub.f32 0.0, %v1986_v47  ;;  %v1990_v55 = vadd.f32 %v1935_v57, %v749_v49 }
 0x1d7   : > { %1550 = vrcp.f32 %v818_v48  ;;  %v821_v56 = vadd.f32 1.0, %v1531_v51  ;;  %v1393_v59 = vpop.f32.mrf.mxu1 }
 0x1d8   : > { %v1533_v33 = vpop.eup %1532  ;;  %1552 = vpow2.f32 %v804_v52  ;;  %v810_v61 = vmul.f32 1.442695, %v781_v53  ;;  %v780_v0 = vsub.f32 0.0, %v1990_v55  ;;  %v1994_v1 = vadd.f32 %v1393_v59, %v1935_v57 }
 0x1d9   : > { %1554 = vrcp.f32 %v821_v56  ;;  %v820_v3 = vadd.f32 1.0, %v1533_v33  ;;  %v759_v5 = vpop.f32.mrf.mxu1 }
 0x1da   : > { %v1535_v7 = vpop.eup %1534  ;;  %1556 = vpow2.f32 %v810_v61  ;;  %v808_v8 = vmul.f32 1.442695, %v780_v0  ;;  %v783_v10 = vsub.f32 0.0, %v1994_v1  ;;  %v1998_v11 = vadd.f32 %v1935_v57, %v759_v5 }
 0x1db   : > { %1558 = vrcp.f32 %v820_v3  ;;  %v823_v12 = vadd.f32 1.0, %v1535_v7 }
 0x1dc   : > { %v1537_v38 = vpop.eup %1536  ;;  %1560 = vpow2.f32 %v808_v8  ;;  %v814_v35 = vmul.f32 1.442695, %v783_v10  ;;  %v782_v15 = vsub.f32 0.0, %v1998_v11 }
 0x1dd   : > { %1562 = vrcp.f32 %v823_v12  ;;  %v822_v18 = vadd.f32 1.0, %v1537_v38 }
 0x1de   : > { %v1539_v19 = vpop.eup %1538  ;;  %1564 = vpow2.f32 %v814_v35  ;;  %v812_v20 = vmul.f32 1.442695, %v782_v15 }
 0x1df   : > { %v1541_v46 = vpop.eup %1540  ;;  %1566 = vrcp.f32 %v822_v18  ;;  %v849_v54 = vmul.f32 %v1539_v19, %v1938_v60 }
 0x1e0   : > { %v1543_v42 = vpop.eup %1542  ;;  %v825_v22 = vadd.f32 1.0, %v1541_v46  ;;  %1568 = vpow2.f32 %v812_v20 }
 0x1e1   : > { %v1545_v25 = vpop.eup %1544  ;;  %v848_v57 = vmul.f32 %v1543_v42, %v1942_v63 }
 0x1e2   : > { %v1547_v26 = vpop.eup %1546  ;;  %v824_v27 = vadd.f32 1.0, %v1545_v25  ;;  %1570 = vrcp.f32 %v825_v22 }
 0x1e3   : > { %v1549_v28 = vpop.eup %1548  ;;  %1426 = vmatprep.mubr.f32.mxu0 %v848_v57  ;;  %v851_v36 = vmul.f32 %v1547_v26, %v1946_v4 }
 0x1e4   : > { %v1551_v29 = vpop.eup %1550  ;;  %1572 = vrcp.f32 %v824_v27  ;;  %v827_v30 = vadd.f32 1.0, %v1549_v28  ;;  %1427 = vmatmul.mubr.f32.vlgmr.msra.gmra.mxu0 %v849_v54 }
 0x1e5   : > { %v1553_v62 = vpop.eup %1552  ;;  %v850_v58 = vmul.f32 %v1551_v29, %v1950_v9 }
 0x1e6   : > { %v1555_v34 = vpop.eup %1554  ;;  %v826_v39 = vadd.f32 1.0, %v1553_v62  ;;  %1574 = vrcp.f32 %v827_v30 }
 0x1e7   : > { %v1557_v6 = vpop.eup %1556  ;;  %1429 = vmatprep.mubr.f32.mxu0 %v850_v58  ;;  %v853_v17 = vmul.f32 %v1555_v34, %v1954_v14 }
 0x1e8   : > { %v1559_v63 = vpop.eup %1558  ;;  %1576 = vrcp.f32 %v826_v39  ;;  %v829_v60 = vadd.f32 1.0, %v1557_v6  ;;  %1430 = vmatmul.mubr.f32.gmra.mxu0 %v851_v36 }
 0x1e9   : > { %v1561_v2 = vpop.eup %1560  ;;  %v852_v41 = vmul.f32 %v1559_v63, %v1958_v16 }
 0x1ea   : > { %v1563_v13 = vpop.eup %1562  ;;  %v828_v31 = vadd.f32 1.0, %v1561_v2  ;;  %1578 = vrcp.f32 %v829_v60 }
 0x1eb   : > { %v1565_v37 = vpop.eup %1564  ;;  %1432 = vmatprep.mubr.f32.mxu0 %v852_v41  ;;  %v855_v45 = vmul.f32 %v1563_v13, %v1962_v21 }
 0x1ec   : > { %v1567_v9 = vpop.eup %1566  ;;  %1580 = vrcp.f32 %v828_v31  ;;  %v831_v4 = vadd.f32 1.0, %v1565_v37  ;;  %1433 = vmatmul.mubr.f32.gmra.mxu0 %v853_v17 }
 0x1ed   : > { %v1569_v43 = vpop.eup %1568  ;;  %v854_v44 = vmul.f32 %v1567_v9, %v1966_v24 }
 0x1ee   : > { %v830_v48 = vadd.f32 1.0, %v1569_v43  ;;  %1582 = vrcp.f32 %v831_v4 }
 0x1ef   : > { %1435 = vmatprep.mubr.f32.mxu0 %v854_v44  ;;  %v1571_v16 = vpop.eup %1570 }
 0x1f0   : > { %1584 = vrcp.f32 %v830_v48  ;;  %1436 = vmatmul.mubr.f32.gmra.mxu0 %v855_v45  ;;  %v857_v51 = vmul.f32 %v1571_v16, %v1970_v50 }
 0x1f1   : > { %v1573_v14 = vpop.eup %1572 }
 0x1f2   : > { %v856_v49 = vmul.f32 %v1573_v14, %v1974_v32 }
 0x1f3   : > { %v1575_v52 = vpop.eup %1574 }
 0x1f4   : > { %1438 = vmatprep.mubr.f32.mxu0 %v856_v49  ;;  %v859_v24 = vmul.f32 %v1575_v52, %v1978_v40  ;;  %v2020_v40 = vld [vmem:[%s2134_s6] ss:$0 sm:$0xff] }
 0x1f5   : > { %v1577_v53 = vpop.eup %1576  ;;  %1439 = vmatmul.mubr.f32.gmra.mxu0 %v857_v51 }
 0x1f6   : > { %v858_v56 = vmul.f32 %v1577_v53, %v1982_v23 }
 0x1f7   : > { %v1579_v21 = vpop.eup %1578 }
 0x1f8   : > { %1441 = vmatprep.mubr.f32.mxu0 %v858_v56  ;;  %v861_v61 = vmul.f32 %v1579_v21, %v1986_v47 }
 0x1f9   : > { %v1581_v59 = vpop.eup %1580  ;;  %1442 = vmatmul.mubr.f32.gmra.mxu0 %v859_v24 }
 0x1fa   : > { %v860_v33 = vmul.f32 %v1581_v59, %v1990_v55 }
 0x1fb   : > { %v1583_v0 = vpop.eup %1582 }
 0x1fc   : > { %1444 = vmatprep.mubr.f32.mxu0 %v860_v33  ;;  %v863_v3 = vmul.f32 %v1583_v0, %v1994_v1 }
 0x1fd   : > { %v1585_v32 = vpop.eup %1584  ;;  %1445 = vmatmul.mubr.f32.gmra.mxu0 %v861_v61 }
 0x1fe   : > { %v862_v50 = vmul.f32 %v1585_v32, %v1998_v11 }
 0x200   : > { %1447 = vmatprep.mubr.f32.mxu0 %v862_v50 }
 0x201   : > { %1448 = vmatmul.mubr.f32.gmra.mxu0 %v863_v3 }
 0x2a4   : > { %v1428_v23 = vpop.f32.mrf.mxu0 }
 0x2a5   : > { %v2023_v55 = vadd.f32 %v1428_v23, %v2020_v40 }
 0x2a6   : > { %v953_v47 = vpop.f32.mrf.mxu0 }
 0x2a7   : > { %v1033_v5 = vsub.f32 0.0, %v2023_v55  ;;  %v2027_v7 = vadd.f32 %v2020_v40, %v953_v47 }
 0x2a8   : > { %v1431_v8 = vpop.f32.mrf.mxu0 }
 0x2a9   : > { %v1050_v10 = vmul.f32 1.442695, %v1033_v5  ;;  %v1032_v1 = vsub.f32 0.0, %v2027_v7  ;;  %v2031_v11 = vadd.f32 %v1431_v8, %v2020_v40 }
 0x2aa   : > { %v963_v12 = vpop.f32.mrf.mxu0 }
 0x2ab   : > { %1586 = vpow2.f32 %v1050_v10  ;;  %v1048_v38 = vmul.f32 1.442695, %v1032_v1  ;;  %v1035_v35 = vsub.f32 0.0, %v2031_v11  ;;  %v2035_v15 = vadd.f32 %v2020_v40, %v963_v12 }
 0x2ac   : > { %v1434_v18 = vpop.f32.mrf.mxu0 }
 0x2ad   : > { %1588 = vpow2.f32 %v1048_v38  ;;  %v1054_v19 = vmul.f32 1.442695, %v1035_v35  ;;  %v1034_v20 = vsub.f32 0.0, %v2035_v15  ;;  %v2039_v46 = vadd.f32 %v1434_v18, %v2020_v40 }
 0x2ae   : > { %v973_v42 = vpop.f32.mrf.mxu0 }
 0x2af   : > { %1590 = vpow2.f32 %v1054_v19  ;;  %v1052_v22 = vmul.f32 1.442695, %v1034_v20  ;;  %v1037_v25 = vsub.f32 0.0, %v2039_v46  ;;  %v2043_v57 = vadd.f32 %v2020_v40, %v973_v42 }
 0x2b0   : > { %v1437_v26 = vpop.f32.mrf.mxu0 }
 0x2b1   : > { %1592 = vpow2.f32 %v1052_v22  ;;  %v1058_v54 = vmul.f32 1.442695, %v1037_v25  ;;  %v1036_v27 = vsub.f32 0.0, %v2043_v57  ;;  %v2047_v28 = vadd.f32 %v1437_v26, %v2020_v40 }
 0x2b2   : > { %v983_v29 = vpop.f32.mrf.mxu0 }
 0x2b3   : > { %1594 = vpow2.f32 %v1058_v54  ;;  %v1056_v30 = vmul.f32 1.442695, %v1036_v27  ;;  %v1039_v62 = vsub.f32 0.0, %v2047_v28  ;;  %v2051_v58 = vadd.f32 %v2020_v40, %v983_v29 }
 0x2b5   : > { %1596 = vpow2.f32 %v1056_v30  ;;  %v1062_v34 = vmul.f32 1.442695, %v1039_v62  ;;  %v1038_v36 = vsub.f32 0.0, %v2051_v58  ;;  %v1440_v39 = vpop.f32.mrf.mxu0 }
 0x2b6   : > { %v2055_v6 = vadd.f32 %v1440_v39, %v2020_v40 }
 0x2b7   : > { %1598 = vpow2.f32 %v1062_v34  ;;  %v1060_v63 = vmul.f32 1.442695, %v1038_v36  ;;  %v993_v60 = vpop.f32.mrf.mxu0 }
 0x2b8   : > { %v1587_v2 = vpop.eup %1586  ;;  %v1041_v41 = vsub.f32 0.0, %v2055_v6  ;;  %v2059_v13 = vadd.f32 %v2020_v40, %v993_v60 }
 0x2b9   : > { %v1081_v17 = vadd.f32 1.0, %v1587_v2  ;;  %1600 = vpow2.f32 %v1060_v63  ;;  %v1443_v31 = vpop.f32.mrf.mxu0 }
 0x2ba   : > { %v1589_v37 = vpop.eup %1588  ;;  %v1066_v9 = vmul.f32 1.442695, %v1041_v41  ;;  %v1040_v4 = vsub.f32 0.0, %v2059_v13  ;;  %v2063_v43 = vadd.f32 %v1443_v31, %v2020_v40 }
 0x2bb   : > { %1602 = vrcp.f32 %v1081_v17  ;;  %v1080_v44 = vadd.f32 1.0, %v1589_v37  ;;  %v1003_v45 = vpop.f32.mrf.mxu0 }
 0x2bc   : > { %v1591_v48 = vpop.eup %1590  ;;  %1604 = vpow2.f32 %v1066_v9  ;;  %v1064_v16 = vmul.f32 1.442695, %v1040_v4  ;;  %v1043_v14 = vsub.f32 0.0, %v2063_v43  ;;  %v2067_v49 = vadd.f32 %v2020_v40, %v1003_v45 }
 0x2bd   : > { %1606 = vrcp.f32 %v1080_v44  ;;  %v1083_v51 = vadd.f32 1.0, %v1591_v48  ;;  %v1446_v52 = vpop.f32.mrf.mxu0 }
 0x2be   : > { %v1593_v53 = vpop.eup %1592  ;;  %1608 = vpow2.f32 %v1064_v16  ;;  %v1070_v56 = vmul.f32 1.442695, %v1043_v14  ;;  %v1042_v24 = vsub.f32 0.0, %v2067_v49  ;;  %v2071_v21 = vadd.f32 %v1446_v52, %v2020_v40 }
 0x2bf   : > { %1610 = vrcp.f32 %v1083_v51  ;;  %v1082_v59 = vadd.f32 1.0, %v1593_v53  ;;  %v1013_v33 = vpop.f32.mrf.mxu0 }
 0x2c0   : > { %v1595_v61 = vpop.eup %1594  ;;  %1612 = vpow2.f32 %v1070_v56  ;;  %v1068_v0 = vmul.f32 1.442695, %v1042_v24  ;;  %v1045_v32 = vsub.f32 0.0, %v2071_v21  ;;  %v2075_v50 = vadd.f32 %v2020_v40, %v1013_v33 }
 0x2c1   : > { %1614 = vrcp.f32 %v1082_v59  ;;  %v1085_v3 = vadd.f32 1.0, %v1595_v61  ;;  %v1449_v23 = vpop.f32.mrf.mxu0 }
 0x2c2   : > { %v1597_v47 = vpop.eup %1596  ;;  %1616 = vpow2.f32 %v1068_v0  ;;  %v1074_v5 = vmul.f32 1.442695, %v1045_v32  ;;  %v1044_v8 = vsub.f32 0.0, %v2075_v50  ;;  %v2079_v10 = vadd.f32 %v1449_v23, %v2020_v40 }
 0x2c3   : > { %1618 = vrcp.f32 %v1085_v3  ;;  %v1084_v1 = vadd.f32 1.0, %v1597_v47  ;;  %v1023_v12 = vpop.f32.mrf.mxu0 }
 0x2c4   : > { %v1599_v38 = vpop.eup %1598  ;;  %1620 = vpow2.f32 %v1074_v5  ;;  %v1072_v35 = vmul.f32 1.442695, %v1044_v8  ;;  %v1047_v18 = vsub.f32 0.0, %v2079_v10  ;;  %v2083_v19 = vadd.f32 %v2020_v40, %v1023_v12 }
 0x2c5   : > { %1622 = vrcp.f32 %v1084_v1  ;;  %v1087_v20 = vadd.f32 1.0, %v1599_v38 }
 0x2c6   : > { %v1601_v42 = vpop.eup %1600  ;;  %1624 = vpow2.f32 %v1072_v35  ;;  %v1078_v22 = vmul.f32 1.442695, %v1047_v18  ;;  %v1046_v25 = vsub.f32 0.0, %v2083_v19 }
 0x2c7   : > { %1626 = vrcp.f32 %v1087_v20  ;;  %v1086_v26 = vadd.f32 1.0, %v1601_v42 }
 0x2c8   : > { %v1603_v54 = vpop.eup %1602  ;;  %1628 = vpow2.f32 %v1078_v22  ;;  %v1076_v40 = vmul.f32 1.442695, %v1046_v25 }
 0x2c9   : > { %v1605_v27 = vpop.eup %1604  ;;  %v1113_v29 = vmul.f32 %v1603_v54, %v2023_v55  ;;  %1630 = vrcp.f32 %v1086_v26 }
 0x2ca   : > { %v1607_v30 = vpop.eup %1606  ;;  %v1089_v62 = vadd.f32 1.0, %v1605_v27  ;;  %1632 = vpow2.f32 %v1076_v40 }
 0x2cb   : > { %v1609_v34 = vpop.eup %1608  ;;  %1129 = vst [vmem:[%s2091_s22 + $0x8] sm:$0xff] %v1113_v29  ;;  %v1112_v36 = vmul.f32 %v1607_v30, %v2027_v7 }
 0x2cc   : > { %v1611_v39 = vpop.eup %1610  ;;  %1634 = vrcp.f32 %v1089_v62  ;;  %v1088_v63 = vadd.f32 1.0, %v1609_v34 }
 0x2cd   : > { %v1613_v60 = vpop.eup %1612  ;;  %1128 = vst [vmem:[%s2091_s22] sm:$0xff] %v1112_v36  ;;  %v1115_v2 = vmul.f32 %v1611_v39, %v2031_v11 }
 0x2ce   : > { %v1615_v41 = vpop.eup %1614  ;;  %1636 = vrcp.f32 %v1088_v63  ;;  %v1091_v55 = vadd.f32 1.0, %v1613_v60 }
 0x2cf   : > { %v1617_v17 = vpop.eup %1616  ;;  %1131 = vst [vmem:[%s2091_s22 + $0x18] sm:$0xff] %v1115_v2  ;;  %v1114_v31 = vmul.f32 %v1615_v41, %v2035_v15 }
 0x2d0   : > { %v1619_v37 = vpop.eup %1618  ;;  %1638 = vrcp.f32 %v1091_v55  ;;  %v1090_v7 = vadd.f32 1.0, %v1617_v17 }
 0x2d1   : > { %v1621_v9 = vpop.eup %1620  ;;  %1130 = vst [vmem:[%s2091_s22 + $0x10] sm:$0xff] %v1114_v31  ;;  %v1117_v4 = vmul.f32 %v1619_v37, %v2039_v46 }
 0x2d2   : > { %v1623_v44 = vpop.eup %1622  ;;  %1640 = vrcp.f32 %v1090_v7  ;;  %v1093_v11 = vadd.f32 1.0, %v1621_v9 }
 0x2d3   : > { %v1625_v45 = vpop.eup %1624  ;;  %1133 = vst [vmem:[%s2091_s22 + $0x28] sm:$0xff] %v1117_v4  ;;  %v1116_v48 = vmul.f32 %v1623_v44, %v2043_v57 }
 0x2d4   : > { %v1627_v16 = vpop.eup %1626  ;;  %1642 = vrcp.f32 %v1093_v11  ;;  %v1092_v15 = vadd.f32 1.0, %v1625_v45 }
 0x2d5   : > { %v1629_v14 = vpop.eup %1628  ;;  %1132 = vst [vmem:[%s2091_s22 + $0x20] sm:$0xff] %v1116_v48  ;;  %v1119_v51 = vmul.f32 %v1627_v16, %v2047_v28 }
 0x2d6   : > { %v1631_v52 = vpop.eup %1630  ;;  %1644 = vrcp.f32 %v1092_v15  ;;  %v1095_v46 = vadd.f32 1.0, %v1629_v14 }
 0x2d7   : > { %v1633_v53 = vpop.eup %1632  ;;  %1135 = vst [vmem:[%s2091_s22 + $0x38] sm:$0xff] %v1119_v51  ;;  %v1118_v56 = vmul.f32 %v1631_v52, %v2051_v58 }
 0x2d8   : > { %1646 = vrcp.f32 %v1095_v46  ;;  %v1094_v57 = vadd.f32 1.0, %v1633_v53 }
 0x2d9   : > { %v1635_v24 = vpop.eup %1634  ;;  %1134 = vst [vmem:[%s2091_s22 + $0x30] sm:$0xff] %v1118_v56 }
 0x2da   : > { %v1121_v59 = vmul.f32 %v1635_v24, %v2055_v6  ;;  %1648 = vrcp.f32 %v1094_v57 }
 0x2db   : > { %v1637_v33 = vpop.eup %1636 }
 0x2dc   : > { %1137 = vst [vmem:[%s2091_s22 + $0x48] sm:$0xff] %v1121_v59  ;;  %v1120_v28 = vmul.f32 %v1637_v33, %v2059_v13 }
 0x2dd   : > { %v1639_v61 = vpop.eup %1638 }
 0x2de   : > { %1136 = vst [vmem:[%s2091_s22 + $0x40] sm:$0xff] %v1120_v28  ;;  %v1123_v0 = vmul.f32 %v1639_v61, %v2063_v43 }
 0x2df   : > { %v1641_v58 = vpop.eup %1640 }
 0x2e0   : > { %1139 = vst [vmem:[%s2091_s22 + $0x58] sm:$0xff] %v1123_v0  ;;  %v1122_v32 = vmul.f32 %v1641_v58, %v2067_v49 }
 0x2e1   : > { %v1643_v3 = vpop.eup %1642 }
 0x2e2   : > { %1138 = vst [vmem:[%s2091_s22 + $0x50] sm:$0xff] %v1122_v32  ;;  %v1125_v6 = vmul.f32 %v1643_v3, %v2071_v21 }
 0x2e3   : > { %v1645_v23 = vpop.eup %1644 }
 0x2e4   : > { %1141 = vst [vmem:[%s2091_s22 + $0x68] sm:$0xff] %v1125_v6  ;;  %v1124_v47 = vmul.f32 %v1645_v23, %v2075_v50 }
 0x2e5   : > { %v1647_v5 = vpop.eup %1646 }
 0x2e6   : > { %1140 = vst [vmem:[%s2091_s22 + $0x60] sm:$0xff] %v1124_v47  ;;  %v1127_v13 = vmul.f32 %v1647_v5, %v2079_v10 }
 0x2e7   : > { %v1649_v8 = vpop.eup %1648 }
 0x2e8   : > { %1143 = vst [vmem:[%s2091_s22 + $0x78] sm:$0xff] %v1127_v13  ;;  %v1126_v43 = vmul.f32 %v1649_v8, %v2083_v19 }
 0x2ea   : > { %1142 = vst [vmem:[%s2091_s22 + $0x70] sm:$0xff] %v1126_v43 }
 0x2eb PF: > { %s17_s24 = sadd.s32 1, %s1656_s24  }
 0x2ec   : > { %p14_p4 = scmp.ge.s32.totalorder %s17_s24, 4  }
 0x2ee   :  { %16 = sbr.rel (!%p14_p4) target bundleno = 1 (0x1), region = 78 }

</bundles_post_ra>
